<compile_context>
chip_gen: v6e
topology: v6e:2x2x1
jax: 0.10.0
libtpu: 0.0.40
codegen_flags: <defaults>
</compile_context>

<pallas_src>
import functools

import jax
import jax.numpy as jnp
import numpy as np
from jax.experimental import pallas as pl
from jax.experimental.pallas import tpu as pltpu


# ----------------------------------------------------------------------------
# Pallas kernel: one batch tile (batch on the lane axis).
# ----------------------------------------------------------------------------
def _generator_kernel(seg_bounds,
                      n_ref, c_ref,            # (d_emb, TB), (d_cond, TB) bf16
                      wxn_ref, wxc_ref,        # fused x-operand weights (152, 16)
                      w1a_ref,                 # (d_h1, d_h0) bf16
                      wfa_ref,                 # (d_out, d_h1) bf16
                      t0_ref, t1_ref, bf_ref,  # (d_h0,1)/(d_h1,1)/(d_out,1) f32
                      o_ref):                  # (d_out, TB)
    d_h1, d_h0 = w1a_ref.shape
    d_out = o_ref.shape[0]

    # One fused x-operand matmul, split over the noise/cond contraction rows
    # (equivalent to concat([noise, cond]) without an in-kernel concat).
    xw = (jnp.dot(wxn_ref[...], n_ref[...], preferred_element_type=jnp.float32)
          + jnp.dot(wxc_ref[...], c_ref[...], preferred_element_type=jnp.float32))
    xw0 = xw[:d_h0]                       # W0'^T x        (d_h0, TB)
    xw1 = xw[d_h0:d_h0 + d_h1]            # W1b'^T x       (d_h1, TB)
    xwf = xw[d_h0 + d_h1:]                # Wfb^T  x       (d_out, TB)

    # hidden block 0: relu(W0'^T x + t0')       (bias + BN folded)
    h0 = jnp.maximum(xw0 + t0_ref[...], 0.0)

    # hidden block 1 (skip): relu(W1a'^T h0 + W1b'^T x + t1')
    h1 = jnp.dot(w1a_ref[...], h0.astype(jnp.bfloat16),
                 preferred_element_type=jnp.float32) + xw1
    h1 = jnp.maximum(h1 + t1_ref[...], 0.0)

    # final linear (skip): Wfa^T h1 + Wfb^T x + bf
    y = (jnp.dot(wfa_ref[...], h1.astype(jnp.bfloat16),
                 preferred_element_type=jnp.float32) + xwf + bf_ref[...])

    out = y
    if seg_bounds:
        # Row-invariant segment masks from a (d_out, 1) iota.
        row = jax.lax.broadcasted_iota(jnp.int32, (d_out, 1), 0)
        # Scatter each segment's column-wise max into its rows, then ONE exp pass.
        m_all = y
        for lo, hi in seg_bounds:
            mask = (row >= lo) & (row < hi)
            m = jnp.max(jnp.where(mask, y, -jnp.inf), axis=0, keepdims=True)
            m_all = jnp.where(mask, m, m_all)
        e = jnp.exp(y - m_all)            # non-segment rows: exp(0) = 1 (unused)
        for lo, hi in seg_bounds:
            mask = (row >= lo) & (row < hi)
            s = jnp.sum(jnp.where(mask, e, 0.0), axis=0, keepdims=True)
            # approx=False: rows sum to 1 exactly enough for downstream sampling;
            # cost is negligible here (EUP is idle in the epilogue anyway).
            inv = pl.reciprocal(s, approx=False)
            out = jnp.where(mask, e * inv, out)

    o_ref[...] = out.astype(o_ref.dtype)


# ----------------------------------------------------------------------------
# Helpers
# ----------------------------------------------------------------------------
def _round_up(x, m):
    return ((x + m - 1) // m) * m


def _segment_bounds(disc_col_category_idx):
    """Replicates the PyTorch softmax loop; returns non-empty [lo, hi) slices."""
    bounds = []
    prev_c = 0
    for c in range(len(disc_col_category_idx)):
        lo = disc_col_category_idx[prev_c]
        hi = disc_col_category_idx[c]
        if hi > lo:
            bounds.append((lo, hi))
        prev_c = c
    return tuple(bounds)


def init_params(key, architecture):
    """Deterministic synthetic parameters (PyTorch-Linear-style uniform init)."""
    assert len(architecture) == 4, "this script wires exactly 2 hidden blocks"
    d_in, d_h0, d_h1, d_out = architecture
    eps = 1e-5
    ks = list(jax.random.split(key, 8))

    def linear(k, fan_in, fan_out):
        kw, kb = jax.random.split(k)
        bound = 1.0 / np.sqrt(fan_in)
        w = jax.random.uniform(kw, (fan_in, fan_out), jnp.float32, -bound, bound)
        b = jax.random.uniform(kb, (1, fan_out), jnp.float32, -bound, bound)
        return w, b

    def bn(k, dim):
        kg, kb, km, kv = jax.random.split(k, 4)
        gamma = jax.random.uniform(kg, (1, dim), jnp.float32, 0.5, 1.5)
        beta = jax.random.uniform(kb, (1, dim), jnp.float32, -0.1, 0.1)
        rmean = 0.1 * jax.random.normal(km, (1, dim), jnp.float32)
        rvar = jax.random.uniform(kv, (1, dim), jnp.float32, 0.5, 1.5)
        scale = gamma / jnp.sqrt(rvar + eps)
        shift = beta - rmean * scale
        return scale, shift

    p = {}
    p["W0"], p["b0"] = linear(ks[0], d_in, d_h0)
    p["s0"], p["t0"] = bn(ks[1], d_h0)
    p["W1"], p["b1"] = linear(ks[2], d_h0 + d_in, d_h1)   # skip concat fan-in
    p["s1"], p["t1"] = bn(ks[3], d_h1)
    p["Wf"], p["bf"] = linear(ks[4], d_h1 + d_in, d_out)  # skip concat fan-in
    return p


def potnet_cond_generator_forward(noise, cond, params, architecture,
                                  disc_col_category_idx, tile_batch=None,
                                  out_dtype=jnp.float32, transpose_output=True):
    """Host glue (BN/bias folding, weight split/cast, layout) + Pallas hot path.

    tile_batch: batch tile size (multiple of 128). Default auto: 4096, split
        in two if that would collapse the grid to one tile (v7x megacore).
    out_dtype: jnp.float32 (default) or jnp.bfloat16 (halves output HBM bytes,
        useful on v5e if downstream tolerates bf16 probabilities).
    transpose_output: True -> return (B, d_out) like the PyTorch module;
        False -> return (d_out, B) lane-major (skips the transpose-back copy).
    """
    d_in, d_h0, d_h1, d_out = architecture
    d_emb = noise.shape[1]
    B = noise.shape[0]

    # ---- fold bias + eval-mode BatchNorm into weights / shifts --------------
    W0 = params["W0"] * params["s0"]                              # (d_in, d_h0)
    t0 = (params["b0"] * params["s0"] + params["t0"]).reshape(d_h0, 1)
    W1 = params["W1"] * params["s1"]                              # (d_h0+d_in, d_h1)
    t1 = (params["b1"] * params["s1"] + params["t1"]).reshape(d_h1, 1)
    W1a, W1b = W1[:d_h0], W1[d_h0:]
    Wfa, Wfb = params["Wf"][:d_h1], params["Wf"][d_h1:]
    bf = params["bf"].reshape(d_out, 1)

    # ---- fused x-operand weight, transposed for the lane-dense layout -------
    # Wx = [W0' | W1b' | Wfb]  ->  one (d_h0+d_h1+d_out, d_in) MXU push per tile.
    WxT = jnp.concatenate([W0, W1b, Wfb], axis=1).T               # (152, d_in)
    wxn = WxT[:, :d_emb].astype(jnp.bfloat16)                     # noise rows
    wxc = WxT[:, d_emb:].astype(jnp.bfloat16)                     # cond rows
    w1aT = W1a.T.astype(jnp.bfloat16)                             # (d_h1, d_h0)
    wfaT = Wfa.T.astype(jnp.bfloat16)                             # (d_out, d_h1)

    # ---- inputs: transpose + cast (batch -> lane dim); pad fuses into it ----
    b_pad = _round_up(max(B, 1), 128)
    noise_t = noise.T.astype(jnp.bfloat16)                        # (d_emb, B)
    cond_t = cond.T.astype(jnp.bfloat16)                          # (d_cond, B)
    if b_pad != B:
        noise_t = jnp.pad(noise_t, ((0, 0), (0, b_pad - B)))
        cond_t = jnp.pad(cond_t, ((0, 0), (0, b_pad - B)))

    # ---- batch tile size -----------------------------------------------------
    tb = int(tile_batch) if tile_batch is not None else 4096
    tb = _round_up(max(128, min(tb, b_pad)), 128)
    num_tiles = pl.cdiv(b_pad, tb)
    if tile_batch is None and num_tiles == 1 and b_pad >= 256:
        # v7x megacore: keep >=2 tiles so ("parallel",) can use both TensorCores.
        tb = _round_up(pl.cdiv(b_pad, 2), 128)
        num_tiles = pl.cdiv(b_pad, tb)

    # Trimmed VMEM limit: ~16 MiB covers TB=4096 (tiles + intermediates) with
    # headroom; scales up for bigger tiles instead of reserving 32 MiB always.
    vmem_limit = max(16, (4 * tb) // 1024) * 1024 * 1024

    seg_bounds = _segment_bounds(disc_col_category_idx)
    kernel = functools.partial(_generator_kernel, seg_bounds)

    def resident(shape):
        # Full-array block, same block every grid step -> fetched once, stays in VMEM.
        return pl.BlockSpec(shape, lambda i: (0, 0))

    n_mix = d_h0 + d_h1 + d_out
    out_t = pl.pallas_call(
        kernel,
        out_shape=jax.ShapeDtypeStruct((d_out, b_pad), out_dtype),
        grid_spec=pltpu.PrefetchScalarGridSpec(
            num_scalar_prefetch=0,
            grid=(num_tiles,),
            in_specs=[
                pl.BlockSpec((d_emb, tb), lambda i: (0, i)),          # noise tile
                pl.BlockSpec((d_in - d_emb, tb), lambda i: (0, i)),   # cond tile
                resident((n_mix, d_emb)),                             # WxT noise rows
                resident((n_mix, d_in - d_emb)),                      # WxT cond rows
                resident((d_h1, d_h0)),                               # W1a'^T
                resident((d_out, d_h1)),                              # Wfa^T
                resident((d_h0, 1)), resident((d_h1, 1)),             # t0', t1'
                resident((d_out, 1)),                                 # bf
            ],
            out_specs=pl.BlockSpec((d_out, tb), lambda i: (0, i)),
        ),
        compiler_params=pltpu.CompilerParams(
            dimension_semantics=("parallel",),      # megacore sharding on v7x
            vmem_limit_bytes=int(vmem_limit),
        ),
    )(noise_t, cond_t, wxn, wxc, w1aT, wfaT, t0, t1, bf)

    out_t = out_t[:, :B]
    if transpose_output:
        return out_t.T          # (B, d_out); slice fuses into this copy
    return out_t                # (d_out, B) lane-major


def reference_forward(noise, cond, params, architecture, disc_col_category_idx):
    """Pure-JAX f32 reference mirroring the PyTorch forward exactly (eval BN)."""
    d_in = architecture[0]
    x = jnp.concatenate([noise, cond], axis=1).reshape(-1, d_in)
    skip = x
    h = x @ params["W0"] + params["b0"]
    h = jnp.maximum(h * params["s0"] + params["t0"], 0.0)
    h = jnp.concatenate([h, skip], axis=-1) @ params["W1"] + params["b1"]
    h = jnp.maximum(h * params["s1"] + params["t1"], 0.0)
    y = jnp.concatenate([h, skip], axis=-1) @ params["Wf"] + params["bf"]
    out = y
    for lo, hi in _segment_bounds(disc_col_category_idx):
        out = out.at[:, lo:hi].set(jax.nn.softmax(y[:, lo:hi], axis=1))
    return out


# ----------------------------------------------------------------------------
if __name__ == "__main__":
    embedding_dim = 16
    cond_dim = 16
    output_dim = 24
    architecture = [embedding_dim + cond_dim, 64, 64, output_dim]
    disc_col_category_idx = [16, 20, 24]
    batch = 8

    key = jax.random.PRNGKey(0)
    k_noise, k_cond, k_params = jax.random.split(key, 3)
    noise = jax.random.normal(k_noise, (batch, embedding_dim), jnp.float32)
    cond = jax.random.normal(k_cond, (batch, cond_dim), jnp.float32)
    params = init_params(k_params, architecture)

    out = potnet_cond_generator_forward(noise, cond, params, architecture,
                                        disc_col_category_idx)
    out = jax.block_until_ready(out)

    ref = reference_forward(noise, cond, params, architecture,
                            disc_col_category_idx)
    # Tolerance accounts for bf16 MXU inputs vs the f32 reference.
    if not np.allclose(np.asarray(out), np.asarray(ref), rtol=2e-2, atol=2e-2):
        diff = np.max(np.abs(np.asarray(out) - np.asarray(ref)))
        raise AssertionError(
            f"Pallas kernel mismatch vs JAX reference (max |diff|={diff})")

    print("KERNEL_OK")
</pallas_src>

<mosaic_0001>
module attributes {stable_mosaic.version = 11 : i64} {
  func.func @_generator_kernel(%arg0: i32, %arg1: memref<16x128xbf16, #tpu.memory_space<vmem>>, %arg2: memref<16x128xbf16, #tpu.memory_space<vmem>>, %arg3: memref<152x16xbf16, #tpu.memory_space<vmem>>, %arg4: memref<152x16xbf16, #tpu.memory_space<vmem>>, %arg5: memref<64x64xbf16, #tpu.memory_space<vmem>>, %arg6: memref<24x64xbf16, #tpu.memory_space<vmem>>, %arg7: memref<64x1xf32, #tpu.memory_space<vmem>>, %arg8: memref<64x1xf32, #tpu.memory_space<vmem>>, %arg9: memref<24x1xf32, #tpu.memory_space<vmem>>, %arg10: memref<24x128xf32, #tpu.memory_space<vmem>>) attributes {dimension_semantics = [#tpu.dimension_semantics<parallel>], iteration_bounds = array<i64: 1>, scalar_prefetch = 0 : i64, scratch_operands = 0 : i64, tpu.core_type = #tpu.core_type<tc>, window_params = [{transform_indices = @transform_0, window_bounds = array<i64: 16, 128>}, {transform_indices = @transform_1, window_bounds = array<i64: 16, 128>}, {pipeline_mode = #tpu.pipeline_mode<synchronous>, transform_indices = @transform_2, window_bounds = array<i64: 152, 16>}, {pipeline_mode = #tpu.pipeline_mode<synchronous>, transform_indices = @transform_3, window_bounds = array<i64: 152, 16>}, {pipeline_mode = #tpu.pipeline_mode<synchronous>, transform_indices = @transform_4, window_bounds = array<i64: 64, 64>}, {pipeline_mode = #tpu.pipeline_mode<synchronous>, transform_indices = @transform_5, window_bounds = array<i64: 24, 64>}, {pipeline_mode = #tpu.pipeline_mode<synchronous>, transform_indices = @transform_6, window_bounds = array<i64: 64, 1>}, {pipeline_mode = #tpu.pipeline_mode<synchronous>, transform_indices = @transform_7, window_bounds = array<i64: 64, 1>}, {pipeline_mode = #tpu.pipeline_mode<synchronous>, transform_indices = @transform_8, window_bounds = array<i64: 24, 1>}, {transform_indices = @transform_9, window_bounds = array<i64: 24, 128>}]} {
    %c0 = arith.constant 0 : index
    %c0_0 = arith.constant 0 : index
    %0 = vector.load %arg3[%c0, %c0_0] : memref<152x16xbf16, #tpu.memory_space<vmem>>, vector<152x16xbf16>
    %c0_1 = arith.constant 0 : index
    %c0_2 = arith.constant 0 : index
    %1 = vector.load %arg1[%c0_1, %c0_2] : memref<16x128xbf16, #tpu.memory_space<vmem>>, vector<16x128xbf16>
    %cst = arith.constant dense<0.000000e+00> : vector<152x128xf32>
    %2 = tpu.matmul %0, %1, %cst {dimension_numbers = #tpu.dot_dimension_numbers<[1], [0], [0], [1], [0, 0, 1, 1], [], []>} : vector<152x16xbf16>, vector<16x128xbf16>, vector<152x128xf32> -> vector<152x128xf32>
    %c0_3 = arith.constant 0 : index
    %c0_4 = arith.constant 0 : index
    %3 = vector.load %arg4[%c0_3, %c0_4] : memref<152x16xbf16, #tpu.memory_space<vmem>>, vector<152x16xbf16>
    %c0_5 = arith.constant 0 : index
    %c0_6 = arith.constant 0 : index
    %4 = vector.load %arg2[%c0_5, %c0_6] : memref<16x128xbf16, #tpu.memory_space<vmem>>, vector<16x128xbf16>
    %cst_7 = arith.constant dense<0.000000e+00> : vector<152x128xf32>
    %5 = tpu.matmul %3, %4, %cst_7 {dimension_numbers = #tpu.dot_dimension_numbers<[1], [0], [0], [1], [0, 0, 1, 1], [], []>} : vector<152x16xbf16>, vector<16x128xbf16>, vector<152x128xf32> -> vector<152x128xf32>
    %6 = arith.addf %2, %5 : vector<152x128xf32>
    %7 = vector.extract_strided_slice %6 {offsets = [0, 0], sizes = [64, 128], strides = [1, 1]} : vector<152x128xf32> to vector<64x128xf32>
    %8 = vector.extract_strided_slice %6 {offsets = [64, 0], sizes = [64, 128], strides = [1, 1]} : vector<152x128xf32> to vector<64x128xf32>
    %9 = vector.extract_strided_slice %6 {offsets = [128, 0], sizes = [24, 128], strides = [1, 1]} : vector<152x128xf32> to vector<24x128xf32>
    %c0_8 = arith.constant 0 : index
    %c0_9 = arith.constant 0 : index
    %10 = vector.load %arg7[%c0_8, %c0_9] : memref<64x1xf32, #tpu.memory_space<vmem>>, vector<64x1xf32>
    %11 = vector.broadcast %10 : vector<64x1xf32> to vector<64x128xf32>
    %12 = arith.addf %7, %11 : vector<64x128xf32>
    %cst_10 = arith.constant 0.000000e+00 : f32
    %13 = vector.broadcast %cst_10 : f32 to vector<64x128xf32>
    %14 = arith.maximumf %12, %13 : vector<64x128xf32>
    %c0_11 = arith.constant 0 : index
    %c0_12 = arith.constant 0 : index
    %15 = vector.load %arg5[%c0_11, %c0_12] : memref<64x64xbf16, #tpu.memory_space<vmem>>, vector<64x64xbf16>
    %16 = arith.truncf %14 : vector<64x128xf32> to vector<64x128xbf16>
    %cst_13 = arith.constant dense<0.000000e+00> : vector<64x128xf32>
    %17 = tpu.matmul %15, %16, %cst_13 {dimension_numbers = #tpu.dot_dimension_numbers<[1], [0], [0], [1], [0, 0, 1, 1], [], []>} : vector<64x64xbf16>, vector<64x128xbf16>, vector<64x128xf32> -> vector<64x128xf32>
    %18 = arith.addf %17, %8 : vector<64x128xf32>
    %c0_14 = arith.constant 0 : index
    %c0_15 = arith.constant 0 : index
    %19 = vector.load %arg8[%c0_14, %c0_15] : memref<64x1xf32, #tpu.memory_space<vmem>>, vector<64x1xf32>
    %20 = vector.broadcast %19 : vector<64x1xf32> to vector<64x128xf32>
    %21 = arith.addf %18, %20 : vector<64x128xf32>
    %cst_16 = arith.constant 0.000000e+00 : f32
    %22 = vector.broadcast %cst_16 : f32 to vector<64x128xf32>
    %23 = arith.maximumf %21, %22 : vector<64x128xf32>
    %c0_17 = arith.constant 0 : index
    %c0_18 = arith.constant 0 : index
    %24 = vector.load %arg6[%c0_17, %c0_18] : memref<24x64xbf16, #tpu.memory_space<vmem>>, vector<24x64xbf16>
    %25 = arith.truncf %23 : vector<64x128xf32> to vector<64x128xbf16>
    %cst_19 = arith.constant dense<0.000000e+00> : vector<24x128xf32>
    %26 = tpu.matmul %24, %25, %cst_19 {dimension_numbers = #tpu.dot_dimension_numbers<[1], [0], [0], [1], [0, 0, 1, 1], [], []>} : vector<24x64xbf16>, vector<64x128xbf16>, vector<24x128xf32> -> vector<24x128xf32>
    %27 = arith.addf %26, %9 : vector<24x128xf32>
    %c0_20 = arith.constant 0 : index
    %c0_21 = arith.constant 0 : index
    %28 = vector.load %arg9[%c0_20, %c0_21] : memref<24x1xf32, #tpu.memory_space<vmem>>, vector<24x1xf32>
    %29 = vector.broadcast %28 : vector<24x1xf32> to vector<24x128xf32>
    %30 = arith.addf %27, %29 : vector<24x128xf32>
    %31 = tpu.iota {dimensions = array<i32: 0>} : vector<24x1xi32>
    %c16_i32 = arith.constant 16 : i32
    %32 = vector.broadcast %c16_i32 : i32 to vector<24x1xi32>
    %33 = arith.cmpi sge, %31, %32 : vector<24x1xi32>
    %c20_i32 = arith.constant 20 : i32
    %34 = vector.broadcast %c20_i32 : i32 to vector<24x1xi32>
    %35 = arith.cmpi slt, %31, %34 : vector<24x1xi32>
    %36 = arith.andi %33, %35 : vector<24x1xi1>
    %cst_22 = arith.constant 0xFF800000 : f32
    %37 = vector.shape_cast %36 : vector<24x1xi1> to vector<24x1xi1>
    %38 = vector.broadcast %37 : vector<24x1xi1> to vector<24x128xi1>
    %39 = vector.broadcast %cst_22 : f32 to vector<24x128xf32>
    %40 = arith.select %38, %30, %39 : vector<24x128xi1>, vector<24x128xf32>
    %cst_23 = arith.constant dense<0xFF800000> : vector<128xf32>
    %41 = vector.multi_reduction <maximumf>, %40, %cst_23 [0] : vector<24x128xf32> to vector<128xf32>
    %42 = vector.shape_cast %41 : vector<128xf32> to vector<1x128xf32>
    %43 = vector.shape_cast %36 : vector<24x1xi1> to vector<24x1xi1>
    %44 = vector.broadcast %43 : vector<24x1xi1> to vector<24x128xi1>
    %45 = vector.shape_cast %42 : vector<1x128xf32> to vector<1x128xf32>
    %46 = vector.broadcast %45 : vector<1x128xf32> to vector<24x128xf32>
    %47 = arith.select %44, %46, %30 : vector<24x128xi1>, vector<24x128xf32>
    %c20_i32_24 = arith.constant 20 : i32
    %48 = vector.broadcast %c20_i32_24 : i32 to vector<24x1xi32>
    %49 = arith.cmpi sge, %31, %48 : vector<24x1xi32>
    %c24_i32 = arith.constant 24 : i32
    %50 = vector.broadcast %c24_i32 : i32 to vector<24x1xi32>
    %51 = arith.cmpi slt, %31, %50 : vector<24x1xi32>
    %52 = arith.andi %49, %51 : vector<24x1xi1>
    %cst_25 = arith.constant 0xFF800000 : f32
    %53 = vector.shape_cast %52 : vector<24x1xi1> to vector<24x1xi1>
    %54 = vector.broadcast %53 : vector<24x1xi1> to vector<24x128xi1>
    %55 = vector.broadcast %cst_25 : f32 to vector<24x128xf32>
    %56 = arith.select %54, %30, %55 : vector<24x128xi1>, vector<24x128xf32>
    %cst_26 = arith.constant dense<0xFF800000> : vector<128xf32>
    %57 = vector.multi_reduction <maximumf>, %56, %cst_26 [0] : vector<24x128xf32> to vector<128xf32>
    %58 = vector.shape_cast %57 : vector<128xf32> to vector<1x128xf32>
    %59 = vector.shape_cast %52 : vector<24x1xi1> to vector<24x1xi1>
    %60 = vector.broadcast %59 : vector<24x1xi1> to vector<24x128xi1>
    %61 = vector.shape_cast %58 : vector<1x128xf32> to vector<1x128xf32>
    %62 = vector.broadcast %61 : vector<1x128xf32> to vector<24x128xf32>
    %63 = arith.select %60, %62, %47 : vector<24x128xi1>, vector<24x128xf32>
    %64 = arith.subf %30, %63 : vector<24x128xf32>
    %65 = math.exp %64 : vector<24x128xf32>
    %c16_i32_27 = arith.constant 16 : i32
    %66 = vector.broadcast %c16_i32_27 : i32 to vector<24x1xi32>
    %67 = arith.cmpi sge, %31, %66 : vector<24x1xi32>
    %c20_i32_28 = arith.constant 20 : i32
    %68 = vector.broadcast %c20_i32_28 : i32 to vector<24x1xi32>
    %69 = arith.cmpi slt, %31, %68 : vector<24x1xi32>
    %70 = arith.andi %67, %69 : vector<24x1xi1>
    %cst_29 = arith.constant 0.000000e+00 : f32
    %71 = vector.shape_cast %70 : vector<24x1xi1> to vector<24x1xi1>
    %72 = vector.broadcast %71 : vector<24x1xi1> to vector<24x128xi1>
    %73 = vector.broadcast %cst_29 : f32 to vector<24x128xf32>
    %74 = arith.select %72, %65, %73 : vector<24x128xi1>, vector<24x128xf32>
    %cst_30 = arith.constant dense<0.000000e+00> : vector<128xf32>
    %75 = vector.multi_reduction <add>, %74, %cst_30 [0] : vector<24x128xf32> to vector<128xf32>
    %76 = vector.shape_cast %75 : vector<128xf32> to vector<1x128xf32>
    %77 = tpu.reciprocal %76 : vector<1x128xf32> -> vector<1x128xf32>
    %78 = vector.broadcast %77 : vector<1x128xf32> to vector<24x128xf32>
    %79 = arith.mulf %65, %78 : vector<24x128xf32>
    %80 = vector.shape_cast %70 : vector<24x1xi1> to vector<24x1xi1>
    %81 = vector.broadcast %80 : vector<24x1xi1> to vector<24x128xi1>
    %82 = arith.select %81, %79, %30 : vector<24x128xi1>, vector<24x128xf32>
    %c20_i32_31 = arith.constant 20 : i32
    %83 = vector.broadcast %c20_i32_31 : i32 to vector<24x1xi32>
    %84 = arith.cmpi sge, %31, %83 : vector<24x1xi32>
    %c24_i32_32 = arith.constant 24 : i32
    %85 = vector.broadcast %c24_i32_32 : i32 to vector<24x1xi32>
    %86 = arith.cmpi slt, %31, %85 : vector<24x1xi32>
    %87 = arith.andi %84, %86 : vector<24x1xi1>
    %cst_33 = arith.constant 0.000000e+00 : f32
    %88 = vector.shape_cast %87 : vector<24x1xi1> to vector<24x1xi1>
    %89 = vector.broadcast %88 : vector<24x1xi1> to vector<24x128xi1>
    %90 = vector.broadcast %cst_33 : f32 to vector<24x128xf32>
    %91 = arith.select %89, %65, %90 : vector<24x128xi1>, vector<24x128xf32>
    %cst_34 = arith.constant dense<0.000000e+00> : vector<128xf32>
    %92 = vector.multi_reduction <add>, %91, %cst_34 [0] : vector<24x128xf32> to vector<128xf32>
    %93 = vector.shape_cast %92 : vector<128xf32> to vector<1x128xf32>
    %94 = tpu.reciprocal %93 : vector<1x128xf32> -> vector<1x128xf32>
    %95 = vector.broadcast %94 : vector<1x128xf32> to vector<24x128xf32>
    %96 = arith.mulf %65, %95 : vector<24x128xf32>
    %97 = vector.shape_cast %87 : vector<24x1xi1> to vector<24x1xi1>
    %98 = vector.broadcast %97 : vector<24x1xi1> to vector<24x128xi1>
    %99 = arith.select %98, %96, %82 : vector<24x128xi1>, vector<24x128xf32>
    %c0_35 = arith.constant 0 : index
    %c0_36 = arith.constant 0 : index
    %100 = vector.load %arg10[%c0_35, %c0_36] : memref<24x128xf32, #tpu.memory_space<vmem>>, vector<24x128xf32>
    tpu.vector_store %arg10[%c0_35, %c0_36], %99 {strides = array<i32>} : memref<24x128xf32, #tpu.memory_space<vmem>>, vector<24x128xf32>,
    return
  }
  func.func @transform_0(%arg0: i32) -> (i32, i32) {
    %c0_i32 = arith.constant 0 : i32
    %c0_i32_0 = arith.constant 0 : i32
    return %c0_i32, %arg0 : i32, i32
  }
  func.func @transform_1(%arg0: i32) -> (i32, i32) {
    %c0_i32 = arith.constant 0 : i32
    %c0_i32_0 = arith.constant 0 : i32
    return %c0_i32, %arg0 : i32, i32
  }
  func.func @transform_2(%arg0: i32) -> (i32, i32) {
    %c0_i32 = arith.constant 0 : i32
    %c0_i32_0 = arith.constant 0 : i32
    %c0_i32_1 = arith.constant 0 : i32
    return %c0_i32, %c0_i32_0 : i32, i32
  }
  func.func @transform_3(%arg0: i32) -> (i32, i32) {
    %c0_i32 = arith.constant 0 : i32
    %c0_i32_0 = arith.constant 0 : i32
    %c0_i32_1 = arith.constant 0 : i32
    return %c0_i32, %c0_i32_0 : i32, i32
  }
  func.func @transform_4(%arg0: i32) -> (i32, i32) {
    %c0_i32 = arith.constant 0 : i32
    %c0_i32_0 = arith.constant 0 : i32
    %c0_i32_1 = arith.constant 0 : i32
    return %c0_i32, %c0_i32_0 : i32, i32
  }
  func.func @transform_5(%arg0: i32) -> (i32, i32) {
    %c0_i32 = arith.constant 0 : i32
    %c0_i32_0 = arith.constant 0 : i32
    %c0_i32_1 = arith.constant 0 : i32
    return %c0_i32, %c0_i32_0 : i32, i32
  }
  func.func @transform_6(%arg0: i32) -> (i32, i32) {
    %c0_i32 = arith.constant 0 : i32
    %c0_i32_0 = arith.constant 0 : i32
    %c0_i32_1 = arith.constant 0 : i32
    return %c0_i32, %c0_i32_0 : i32, i32
  }
  func.func @transform_7(%arg0: i32) -> (i32, i32) {
    %c0_i32 = arith.constant 0 : i32
    %c0_i32_0 = arith.constant 0 : i32
    %c0_i32_1 = arith.constant 0 : i32
    return %c0_i32, %c0_i32_0 : i32, i32
  }
  func.func @transform_8(%arg0: i32) -> (i32, i32) {
    %c0_i32 = arith.constant 0 : i32
    %c0_i32_0 = arith.constant 0 : i32
    %c0_i32_1 = arith.constant 0 : i32
    return %c0_i32, %c0_i32_0 : i32, i32
  }
  func.func @transform_9(%arg0: i32) -> (i32, i32) {
    %c0_i32 = arith.constant 0 : i32
    %c0_i32_0 = arith.constant 0 : i32
    return %c0_i32, %arg0 : i32, i32
  }
}

</mosaic_0001>

<bundles_post_ra>
// kernel: tpu_custom_call.1
= control target key start
LH: loop header
LB: loop body
LE: loop exit
PB: predicated region body
PF: predicated region fallthrough
CT: control target
= control target key end

     0   :  { %vm130_vm0 = vcmask 130048   ;;  %v1147_v3 = vmov 0   ;;  %s1400_s0 = inlined_call_operand.vmem [shape: bf16[16,128], index: 0, kind: input, shape index: {}]   ;;  %s1401_s1 = inlined_call_operand.vmem [shape: bf16[16,128], index: 1, kind: input, shape index: {}]   ;;  %s1402_s2 = inlined_call_operand.vmem [shape: bf16[152,16], index: 2, kind: input, shape index: {}]   ;;  %s1403_s3 = inlined_call_operand.vmem [shape: bf16[152,16], index: 3, kind: input, shape index: {}]   ;;  %s1404_s4 = inlined_call_operand.vmem [shape: bf16[64,64], index: 4, kind: input, shape index: {}]   ;;  %s1405_s5 = inlined_call_operand.vmem [shape: bf16[24,64], index: 5, kind: input, shape index: {}]   ;;  %s1406_s6 = inlined_call_operand.vmem [shape: f32[64,1], index: 6, kind: input, shape index: {}]   ;;  %s1407_s7 = inlined_call_operand.vmem [shape: f32[64,1], index: 7, kind: input, shape index: {}]   ;;  %s1408_s8 = inlined_call_operand.vmem [shape: f32[24,1], index: 8, kind: input, shape index: {}]   ;;  %s1409_s9 = inlined_call_operand.hbm [shape: f32[24,128], index: 9, kind: output, shape index: {}]  }
   0x1   :  { %v1091_v0 = vld [vmem:[%s1401_s1] sm:$0xff]   ;;  %1089 = vset.pattern.permute.xlu0 %v1147_v3  ;;  %v1095_v5 = vld [vmem:[%s1403_s3 + $0x8] sm:$0xff]   ;;  %1090 = vset.pattern.permute.xlu1 %v1147_v3  ;;  %v1097_v7 = vld [vmem:[%s1403_s3 + $0x10] sm:$0xff]  }
   0x2   :  { %v1092_v1 = vld [vmem:[%s1400_s0] sm:$0xff]   ;;  %1013 = vmatprep.subr.bf16.mxu0 %v1091_v0  ;;  %v1096_v6 = vld [vmem:[%s1402_s2 + $0x8] sm:$0xff]   ;;  %v1098_v8 = vld [vmem:[%s1402_s2 + $0x10] sm:$0xff]  }
   0x3   :  { %v1093_v2 = vld [vmem:[%s1403_s3] sm:$0xff]   ;;  %1035 = vmatprep.subr.bf16.mxu1 %v1092_v1  ;;  %1014 = vmatpush3.bf16.msra.mxu0 %v1091_v0  ;;  %v1099_v9 = vld [vmem:[%s1403_s3 + $0x18] sm:$0xff]   ;;  %v475_v10 = vld [vmem:[%s1406_s6 + $0x30] sm:$0xff] }
   0x4   :  { %v1094_v4 = vld [vmem:[%s1402_s2] sm:$0xff]   ;;  %1036 = vmatpush3.bf16.msra.mxu1 %v1092_v1  ;;  %1015 = vmatprep.mubr.msk.bf16.mxu0 %vm130_vm0, %v1093_v2  ;;  %v1100_v12 = vld [vmem:[%s1402_s2 + $0x18] sm:$0xff]   ;;  %v474_v14 = vld [vmem:[%s1406_s6 + $0x28] sm:$0xff] }
   0x5   :  { %1037 = vmatprep.mubr.msk.bf16.mxu1 %vm130_vm0, %v1094_v4  ;;  %v473_v11 = vld [vmem:[%s1406_s6 + $0x20] sm:$0xff]  ;;  %509 = vperm.xlu0 %1089, %v475_v10   ;;  %v476_v13 = vld [vmem:[%s1406_s6 + $0x38] sm:$0xff]  ;;  %v471_v15 = vld [vmem:[%s1406_s6 + $0x10] sm:$0xff] }
   0x6   :  { %1016 = vmatmul.mubr.msk.bf16.vlgmr.msra.gmra.mxu0 %vm130_vm0, %v1095_v5  ;;  %499 = vperm.xlu1 %1090, %v473_v11   ;;  %v472_v16 = vld [vmem:[%s1406_s6 + $0x18] sm:$0xff]  ;;  %v469_v17 = vld [vmem:[%s1406_s6] sm:$0xff]  ;;  %v470_v18 = vld [vmem:[%s1406_s6 + $0x8] sm:$0xff] }
   0x7   :  { %1038 = vmatmul.mubr.msk.bf16.vlgmr.msra.gmra.mxu1 %vm130_vm0, %v1096_v6  ;;  %1019 = vmatprep.mubr.msk.bf16.mxu0 %vm130_vm0, %v1097_v7  ;;  %v649_v19 = vld [vmem:[%s1407_s7 + $0x30] sm:$0xff]  ;;  %v650_v20 = vld [vmem:[%s1407_s7 + $0x38] sm:$0xff] }
   0x8   :  { %1041 = vmatprep.mubr.msk.bf16.mxu1 %vm130_vm0, %v1098_v8 }
   0x9   :  { %514 = vperm.xlu0 %1089, %v476_v13  }
   0xa   :  { %504 = vperm.xlu1 %1090, %v474_v14  }
   0xd   :  { %489 = vperm.xlu0 %1089, %v471_v15  }
   0xe   :  { %1020 = vmatmul.mubr.msk.bf16.gmra.mxu0 %vm130_vm0, %v1099_v9  ;;  %494 = vperm.xlu1 %1090, %v472_v16  }
   0xf   :  { %1042 = vmatmul.mubr.msk.bf16.gmra.mxu1 %vm130_vm0, %v1100_v12 }
  0x11   :  { %479 = vperm.xlu0 %1089, %v469_v17  }
  0x12   :  { %484 = vperm.xlu1 %1090, %v470_v18  }
  0x15   :  { %683 = vperm.xlu0 %1089, %v649_v19  }
  0x16   :  { %14 = vsyncpa [#allocation3], 0  ;;  %v647_v21 = vld [vmem:[%s1407_s7 + $0x20] sm:$0xff]  ;;  %688 = vperm.xlu1 %1090, %v650_v20   ;;  %v648_v22 = vld [vmem:[%s1407_s7 + $0x28] sm:$0xff]  ;;  %vm565_vm1 = vcmask 523264  }
  0x17   :  { %v645_v23 = vld [vmem:[%s1407_s7 + $0x10] sm:$0xff]  ;;  %v646_v24 = vld [vmem:[%s1407_s7 + $0x18] sm:$0xff]  ;;  %v643_v25 = vld [vmem:[%s1407_s7] sm:$0xff] }
  0x18   :  { %v644_v26 = vld [vmem:[%s1407_s7 + $0x8] sm:$0xff]  ;;  %v778_v27 = vld [vmem:[%s1408_s8 + $0x10] sm:$0xff]  ;;  %v776_v28 = vld [vmem:[%s1408_s8] sm:$0xff] }
  0x19   :  { %673 = vperm.xlu0 %1089, %v647_v21   ;;  %v777_v29 = vld [vmem:[%s1408_s8 + $0x8] sm:$0xff]  ;;  %v1101_v30 = vld [vmem:[%s1403_s3 + $0x20] sm:$0xff]   ;;  %v1105_v34 = vld [vmem:[%s1403_s3 + $0x30] sm:$0xff]  }
  0x1a   :  { %678 = vperm.xlu1 %1090, %v648_v22   ;;  %v1102_v31 = vld [vmem:[%s1402_s2 + $0x20] sm:$0xff]   ;;  %v1103_v32 = vld [vmem:[%s1403_s3 + $0x28] sm:$0xff]   ;;  %1023 = vmatprep.mubr.msk.bf16.mxu0 %vm130_vm0, %v1101_v30  ;;  %v1106_v35 = vld [vmem:[%s1402_s2 + $0x30] sm:$0xff]  }
  0x1b   :  { %v1104_v33 = vld [vmem:[%s1402_s2 + $0x28] sm:$0xff]   ;;  %1045 = vmatprep.mubr.msk.bf16.mxu1 %vm130_vm0, %v1102_v31  ;;  %1024 = vmatmul.mubr.msk.bf16.gmra.mxu0 %vm130_vm0, %v1103_v32  ;;  %v1107_v36 = vld [vmem:[%s1403_s3 + $0x38] sm:$0xff]   ;;  %v1109_v38 = vld [vmem:[%s1403_s3 + $0x40] sm:$0xff]  }
  0x1c   :  { %1046 = vmatmul.mubr.msk.bf16.gmra.mxu1 %vm130_vm0, %v1104_v33  ;;  %v1108_v37 = vld [vmem:[%s1402_s2 + $0x38] sm:$0xff]   ;;  %1027 = vmatprep.mubr.msk.bf16.mxu0 %vm130_vm0, %v1105_v34  ;;  %v1110_v39 = vld [vmem:[%s1402_s2 + $0x40] sm:$0xff]   ;;  %v1111_v40 = vld [vmem:[%s1403_s3 + $0x48] ss:$0 sps:$4 sm:$0xff]  }
  0x1d   :  { %663 = vperm.xlu0 %1089, %v645_v23   ;;  %1049 = vmatprep.mubr.msk.bf16.mxu1 %vm130_vm0, %v1106_v35  ;;  %v1112_v41 = vld [vmem:[%s1402_s2 + $0x48] ss:$0 sps:$4 sm:$0xff]   ;;  %v1113_v42 = vld [vmem:[%s1404_s4] sm:$0xff]   ;;  %v1115_v32 = vld [vmem:[%s1404_s4 + $0x10] sm:$0xff]  }
  0x1e   :  { %668 = vperm.xlu1 %1090, %v646_v24   ;;  %v1114_v31 = vld [vmem:[%s1404_s4 + $0x8] sm:$0xff]   ;;  %v1116_v33 = vld [vmem:[%s1404_s4 + $0x18] sm:$0xff]  }
  0x21   :  { %653 = vperm.xlu0 %1089, %v643_v25  }
  0x22   :  { %658 = vperm.xlu1 %1090, %v644_v26  }
  0x23   :  { %1028 = vmatmul.mubr.msk.bf16.gmra.mxu0 %vm130_vm0, %v1107_v36 }
  0x24   :  { %1050 = vmatmul.mubr.msk.bf16.gmra.mxu1 %vm130_vm0, %v1108_v37  ;;  %1031 = vmatprep.mubr.msk.bf16.mxu0 %vm130_vm0, %v1109_v38 }
  0x25   :  { %791 = vperm.xlu0 %1089, %v778_v27   ;;  %1053 = vmatprep.mubr.msk.bf16.mxu1 %vm130_vm0, %v1110_v39 }
  0x26   :  { %781 = vperm.xlu1 %1090, %v776_v28  }
  0x29   :  { %786 = vperm.xlu0 %1089, %v777_v29  }
  0x2b   :  { %1032 = vmatmul.mubr.msk.bf16.gmra.mxu0 %vm130_vm0, %v1111_v40 }
  0x2c   :  { %1054 = vmatmul.mubr.msk.bf16.gmra.mxu1 %vm130_vm0, %v1112_v41  ;;  %1065 = vmatprep.mubr.msk.bf16.mxu0 %vm565_vm1, %v1113_v42 }
  0x80   :  { %v510_v49 = vpop.permute.xlu0 %509 }
  0x81   :  { %v500_v46 = vpop.permute.xlu1 %499 }
  0x84   :  { %v515_v58 = vpop.permute.xlu0 %514 }
  0x85   :  { %v505_v54 = vpop.permute.xlu1 %504 }
  0x88   :  { %v490_v9 = vpop.permute.xlu0 %489 }
  0x89   :  { %v495_v3 = vpop.permute.xlu1 %494 }
  0x8c   :  { %v480_v24 = vpop.permute.xlu0 %479 }
  0x8d   :  { %v485_v20 = vpop.permute.xlu1 %484 }
  0xc6   :  { %v1017_v43 = vpop.f32.mrf.mxu0 }
  0xc7   :  { %v1039_v44 = vpop.f32.mrf.mxu1 }
  0xc8   :  { %v195_v45 = vpop.f32.mrf.mxu0  ;;  %v400_v4 = vadd.f32 %v1039_v44, %v1017_v43 }
  0xc9   :  { %v391_v47 = vpop.f32.mrf.mxu1 }
  0xca   :  { %v1018_v48 = vpop.f32.mrf.mxu0  ;;  %v519_v15 = vadd.f32 %v490_v9, %v400_v4  ;;  %v392_v16 = vadd.f32 %v391_v47, %v195_v45  ;;  %v689_v4 = vpop.permute.xlu1 %688 }
  0xcb   :  { %v1040_v50 = vpop.f32.mrf.mxu1 }
  0xcc   :  { %v198_v51 = vpop.f32.mrf.mxu0  ;;  %v403_v62 = vadd.f32 %v1040_v50, %v1018_v48  ;;  %v527_v25 = vmax.f32 %v519_v15, 0.0  ;;  %v517_v26 = vadd.f32 %v480_v24, %v392_v16 }
  0xcd   :  { %v394_v52 = vpop.f32.mrf.mxu1 }
  0xce   :  { %v1021_v53 = vpop.f32.mrf.mxu0  ;;  %v520_v10 = vadd.f32 %v495_v3, %v403_v62  ;;  %v395_v11 = vadd.f32 %v394_v52, %v198_v51  ;;  %v525_v29 = vmax.f32 %v517_v26, 0.0  ;;  %v684_v3 = vpop.permute.xlu0 %683 }
  0xcf   :  { %v1043_v55 = vpop.f32.mrf.mxu1 }
  0xd0   :  { %v416_v56 = vadd.f32 %v1043_v55, %v1021_v53  ;;  %v211_v57 = vpop.f32.mrf.mxu0  ;;  %v528_v21 = vmax.f32 %v520_v10, 0.0  ;;  %v518_v22 = vadd.f32 %v485_v20, %v395_v11 }
  0xd1   :  { %v407_v59 = vpop.f32.mrf.mxu1 }
  0xd2   :  { %v408_v60 = vadd.f32 %v407_v59, %v211_v57  ;;  %v1022_v61 = vpop.f32.mrf.mxu0  ;;  %v523_v0 = vadd.f32 %v510_v49, %v416_v56  ;;  %v526_v27 = vmax.f32 %v518_v22, 0.0  ;;  %v542_v28 = vpack.c.bf16 %v528_v21, %v527_v25 }
  0xd3   :  { %v1044_v63 = vpop.f32.mrf.mxu1 }
  0xd4   :  { %v419_v1 = vadd.f32 %v1044_v63, %v1022_v61  ;;  %v214_v2 = vpop.f32.mrf.mxu0  ;;  %v521_v6 = vadd.f32 %v500_v46, %v408_v60  ;;  %v531_v12 = vmax.f32 %v523_v0, 0.0  ;;  %v541_v30 = vpack.c.bf16 %v526_v27, %v525_v29 }
  0xd5   :  { %v410_v5 = vpop.f32.mrf.mxu1 }
  0xd6   :  { %v524_v7 = vadd.f32 %v515_v58, %v419_v1  ;;  %v411_v8 = vadd.f32 %v410_v5, %v214_v2  ;;  %v529_v17 = vmax.f32 %v521_v6, 0.0  ;;  %v1117_v2 = vld [vmem:[%s1405_s5] sm:$0xff]   ;;  %v674_v5 = vpop.permute.xlu0 %673  ;;  %v679_v6 = vpop.permute.xlu1 %678 }
  0xd7   :  { %1081 = vmatprep.mubr.msk.bf16.mxu1 %vm565_vm1, %v1117_v2 }
  0xd8   :  { %v532_v13 = vmax.f32 %v524_v7, 0.0  ;;  %v522_v14 = vadd.f32 %v505_v54, %v411_v8 }
  0xda   :  { %v530_v18 = vmax.f32 %v522_v14, 0.0  ;;  %v544_v19 = vpack.c.bf16 %v532_v13, %v531_v12  ;;  %v664_v8 = vpop.permute.xlu0 %663  ;;  %v669_v11 = vpop.permute.xlu1 %668 }
  0xdb   :  { %v1025_v34 = vpop.f32.mrf.mxu0 }
  0xdc   :  { %1057 = vmatprep.subr.bf16.mxu0 %v544_v19  ;;  %v543_v23 = vpack.c.bf16 %v530_v18, %v529_v17  ;;  %v1047_v35 = vpop.f32.mrf.mxu1 }
  0xdd   :  { %1058 = vmatpush3.bf16.msra.mxu0 %v544_v19  ;;  %v432_v36 = vadd.f32 %v1047_v35, %v1025_v34  ;;  %v227_v37 = vpop.f32.mrf.mxu0 }
  0xde   :  { %1059 = vmatprep.subr.bf16.mxu0 %v543_v23  ;;  %v423_v38 = vpop.f32.mrf.mxu1  ;;  %v654_v17 = vpop.permute.xlu0 %653 }
  0xdf   :  { %v424_v39 = vadd.f32 %v423_v38, %v227_v37  ;;  %v1026_v40 = vpop.f32.mrf.mxu0  ;;  %v659_v22 = vpop.permute.xlu1 %658 }
  0xe0   :  { %v1048_v41 = vpop.f32.mrf.mxu1 }
  0xe1   :  { %1060 = vmatpush3.bf16.msra.mxu0 %v543_v23  ;;  %v435_v42 = vadd.f32 %v1048_v41, %v1026_v40  ;;  %v230_v43 = vpop.f32.mrf.mxu0 }
  0xe2   :  { %1061 = vmatprep.subr.bf16.mxu0 %v542_v28  ;;  %v426_v44 = vpop.f32.mrf.mxu1 }
  0xe3   :  { %v427_v45 = vadd.f32 %v426_v44, %v230_v43  ;;  %v1029_v46 = vpop.f32.mrf.mxu0 }
  0xe4   :  { %v1051_v47 = vpop.f32.mrf.mxu1 }
  0xe5   :  { %1062 = vmatpush3.bf16.msra.mxu0 %v542_v28  ;;  %v448_v48 = vadd.f32 %v1051_v47, %v1029_v46  ;;  %v243_v49 = vpop.f32.mrf.mxu0 }
  0xe6   :  { %1063 = vmatprep.subr.bf16.mxu0 %v541_v30  ;;  %v439_v50 = vpop.f32.mrf.mxu1 }
  0xe7   :  { %v440_v51 = vadd.f32 %v439_v50, %v243_v49  ;;  %v1030_v52 = vpop.f32.mrf.mxu0  ;;  %v797_v49 = vlaneseq }
  0xe8   :  { %v1052_v53 = vpop.f32.mrf.mxu1 }
  0xe9   :  { %1064 = vmatpush3.bf16.msra.mxu0 %v541_v30  ;;  %v451_v54 = vadd.f32 %v1052_v53, %v1030_v52  ;;  %v246_v55 = vpop.f32.mrf.mxu0  ;;  %v798_v50 = vshrl.u32 %v797_v49, 7 }
  0xea   :  { %v442_v56 = vpop.f32.mrf.mxu1 }
  0xeb   :  { %v443_v57 = vadd.f32 %v442_v56, %v246_v55  ;;  %v1033_v58 = vpop.f32.mrf.mxu0  ;;  %v1374_v52 = vadd.s32 16, %v798_v50  ;;  %v792_v55 = vpop.permute.xlu0 %791 }
  0xec   :  { %1066 = vmatmul.mubr.msk.bf16.vlgmr.msra.gmra.mxu0 %vm565_vm1, %v1114_v31  ;;  %v1055_v59 = vpop.f32.mrf.mxu1 }
  0xed   :  { %1069 = vmatprep.mubr.msk.bf16.mxu0 %vm565_vm1, %v1115_v32  ;;  %v1360_v60 = vadd.f32 %v1055_v59, %v1033_v58  ;;  %v259_v61 = vpop.f32.mrf.mxu0  ;;  %vm806_vm2 = vcmp.lt.s32.totalorder %v1374_v52, 20  ;;  %vm832_vm3 = vcmp.ge.s32.totalorder %v1374_v52, 20  ;;  %v782_v59 = vpop.permute.xlu1 %781 }
  0xee   :  { %v455_v62 = vpop.f32.mrf.mxu1 }
  0xef   :  { %v1362_v63 = vadd.f32 %v455_v62, %v259_v61  ;;  %v1034_v0 = vpop.f32.mrf.mxu0 }
  0xf0   :  { %v1056_v1 = vpop.f32.mrf.mxu1 }
  0xf1   :  { %v1368_v7 = vpop.f32.mrf.mxu0 }
  0xf4   :  { %1070 = vmatmul.mubr.msk.bf16.gmra.mxu0 %vm565_vm1, %v1116_v33 }
 0x1ac   :  { %v1067_v9 = vpop.f32.mrf.mxu0 }
 0x1ad   :  { %v621_v10 = vadd.f32 %v1067_v9, %v432_v36 }
 0x1ae   :  { %v612_v12 = vpop.f32.mrf.mxu0 }
 0x1af   :  { %v613_v13 = vadd.f32 %v612_v12, %v424_v39  ;;  %v693_v15 = vadd.f32 %v664_v8, %v621_v10 }
 0x1b0   :  { %v1068_v14 = vpop.f32.mrf.mxu0 }
 0x1b1   :  { %v624_v16 = vadd.f32 %v1068_v14, %v435_v42  ;;  %v691_v19 = vadd.f32 %v654_v17, %v613_v13  ;;  %v701_v24 = vmax.f32 %v693_v15, 0.0 }
 0x1b2   :  { %v615_v18 = vpop.f32.mrf.mxu0 }
 0x1b3   :  { %v694_v20 = vadd.f32 %v669_v11, %v624_v16  ;;  %v616_v21 = vadd.f32 %v615_v18, %v427_v45  ;;  %v699_v29 = vmax.f32 %v691_v19, 0.0 }
 0x1b4   :  { %v1071_v23 = vpop.f32.mrf.mxu0 }
 0x1b5   :  { %v702_v25 = vmax.f32 %v694_v20, 0.0  ;;  %v692_v26 = vadd.f32 %v659_v22, %v616_v21  ;;  %v637_v27 = vadd.f32 %v1071_v23, %v448_v48  ;;  %v1118_v48 = vld [vmem:[%s1405_s5 + $0x8] ss:$0 sps:$4 sm:$0xff]   ;;  %s1148_s5 = smov [#allocation2]  }
 0x1b6   :  { %v628_v28 = vpop.f32.mrf.mxu0  ;;  %s912_s24 = sshll.u32 %s1148_s5, 4  ;;  %s913_s24 = int_to_ptr.vmem [resolvable:$true] %s912_s24 }
 0x1b7   :  { %v700_v30 = vmax.f32 %v692_v26, 0.0  ;;  %v629_v31 = vadd.f32 %v628_v28, %v440_v51  ;;  %v711_v32 = vpack.c.bf16 %v702_v25, %v701_v24  ;;  %v697_v34 = vadd.f32 %v684_v3, %v637_v27  ;;  %v458_v51 = vpop.f32.mrf.mxu1  ;;  %s1125_s8 = scalar_lea.vmem %s913_s24, 384  ;;  %p1130_p1 = scmp.lt.s32.totalorder %s913_s24, %s913_s24 }
 0x1b8   :  { %v1072_v33 = vpop.f32.mrf.mxu0  ;;  %v459_v62 = vadd.f32 %v458_v51, %v1368_v7  ;;  %p1126_p0 = scmp.ne.s32.totalorder %s913_s24, %s1125_s8  ;;  %p1131_p2 = scmp.lt.s32.totalorder %s1125_s8, %s1125_s8 }
 0x1b9   :  { %v640_v35 = vadd.f32 %v1072_v33, %v451_v54  ;;  %v710_v36 = vpack.c.bf16 %v700_v30, %v699_v29  ;;  %v695_v38 = vadd.f32 %v674_v5, %v629_v31  ;;  %v705_v41 = vmax.f32 %v697_v34, 0.0 }
 0x1ba   :  { %v631_v37 = vpop.f32.mrf.mxu0  ;;  %p1132_p3 = por %p1131_p2, %p1130_p1 }
 0x1bb   :  { %v698_v39 = vadd.f32 %v689_v4, %v640_v35  ;;  %v632_v40 = vadd.f32 %v631_v37, %v443_v57  ;;  %v703_v44 = vmax.f32 %v695_v38, 0.0 }
 0x1bc   :  { %p1133_p4 = pnand %p1132_p3, %p1126_p0 }
 0x1bd   :  { %v706_v42 = vmax.f32 %v698_v39, 0.0  ;;  %v696_v43 = vadd.f32 %v679_v6, %v632_v40  ;;  %v787_v6 = vpop.permute.xlu0 %786 }
 0x1bf   :  { %v704_v45 = vmax.f32 %v696_v43, 0.0  ;;  %v713_v46 = vpack.c.bf16 %v706_v42, %v705_v41 }
 0x1c1   :  { %1073 = vmatprep.subr.bf16.mxu1 %v713_v46  ;;  %v712_v47 = vpack.c.bf16 %v704_v45, %v703_v44 }
 0x1c2   :  { %1074 = vmatpush3.bf16.msra.mxu1 %v713_v46 }
 0x1c3   :  { %1075 = vmatprep.subr.bf16.mxu1 %v712_v47 }
 0x1c6   :  { %1076 = vmatpush3.bf16.msra.mxu1 %v712_v47 }
 0x1c7   :  { %1077 = vmatprep.subr.bf16.mxu1 %v711_v32 }
 0x1ca   :  { %1078 = vmatpush3.bf16.msra.mxu1 %v711_v32 }
 0x1cb   :  { %1079 = vmatprep.subr.bf16.mxu1 %v710_v36 }
 0x1ce   :  { %1080 = vmatpush3.bf16.msra.mxu1 %v710_v36 }
 0x1d1   :  { %1082 = vmatmul.mubr.msk.bf16.vlgmr.msra.gmra.mxu1 %vm565_vm1, %v1118_v48 }
 0x291   :  { %v1083_v53 = vpop.f32.mrf.mxu1 }
 0x292   :  { %v771_v54 = vadd.f32 %v1083_v53, %v1360_v60 }
 0x293   :  { %v762_v56 = vpop.f32.mrf.mxu1 }
 0x294   :  { %v796_v57 = vadd.f32 %v792_v55, %v771_v54  ;;  %v763_v58 = vadd.f32 %v762_v56, %v1362_v63 }
 0x295   :  { %v1084_v61 = vpop.f32.mrf.mxu1 }
 0x296   :  { %v818_v0 = vsel %vm806_vm2, %v796_v57, -inf  ;;  %v847_v1 = vsel %vm832_vm3, %v796_v57, -inf  ;;  %v794_v60 = vadd.f32 %v782_v59, %v763_v58 }
 0x297   :  { %v821_v2 = vrot.slane %v818_v0, 4  ;;  %v850_v3 = vrot.slane %v847_v1, 4  ;;  %v765_v4 = vpop.f32.mrf.mxu1 }
 0x298   :  { %904 = vst [vmem:[#allocation2] sm:$0xff] %v794_v60  ;;  %v766_v5 = vadd.f32 %v765_v4, %v459_v62 }
 0x299   :  { %v822_v8 = vmax.f32 %v818_v0, %v821_v2  ;;  %v851_v9 = vmax.f32 %v847_v1, %v850_v3 }
 0x29a   :  { %v795_v63 = vadd.f32 %v787_v6, %v766_v5 }
 0x29b   :  { %v823_v10 = vrot.slane %v822_v8, 2  ;;  %v852_v11 = vrot.slane %v851_v9, 2 }
 0x29c   :  { %905 = vst [vmem:[#allocation2 + $0x8] sm:$0xff] %v795_v63 }
 0x29d   :  { %v824_v7 = vmax.f32 %v822_v8, %v823_v10  ;;  %v853_v12 = vmax.f32 %v851_v9, %v852_v11 }
 0x29f   :  { %v825_v13 = vrot.slane %v824_v7, 1  ;;  %v854_v14 = vrot.slane %v853_v12, 1 }
 0x2a1   :  { %v826_v15 = vmax.f32 %v824_v7, %v825_v13  ;;  %v855_v16 = vmax.f32 %v853_v12, %v854_v14 }
 0x2a3   :  { %v829_v17 = vsel %vm806_vm2, %v826_v15, %v796_v57 }
 0x2a4   :  { %v858_v18 = vsel %vm832_vm3, %v855_v16, %v829_v17 }
 0x2a5   :  { %v861_v19 = vsub.f32 %v796_v57, %v858_v18 }
 0x2a7   :  { %v866_v20 = vmul.f32 1.442695, %v861_v19 }
 0x2a9   :  { %1119 = vpow2.f32 %v866_v20 }
 0x2b6   :  { %v1120_v21 = vpop.eup %1119 }
 0x2b7   :  { %v870_v22 = vsel %vm806_vm2, %v1120_v21, 0.0  ;;  %v888_v23 = vsel %vm832_vm3, %v1120_v21, 0.0 }
 0x2b8   :  { %v873_v24 = vrot.slane %v870_v22, 4  ;;  %v891_v25 = vrot.slane %v888_v23, 4 }
 0x2ba   :  { %v874_v26 = vadd.f32 %v873_v24, %v870_v22  ;;  %v892_v27 = vadd.f32 %v891_v25, %v888_v23 }
 0x2bc   :  { %v875_v28 = vrot.slane %v874_v26, 2  ;;  %v893_v29 = vrot.slane %v892_v27, 2 }
 0x2be   :  { %v876_v30 = vadd.f32 %v875_v28, %v874_v26  ;;  %v894_v31 = vadd.f32 %v893_v29, %v892_v27 }
 0x2c0   :  { %v877_v32 = vrot.slane %v876_v30, 1  ;;  %v895_v33 = vrot.slane %v894_v31, 1 }
 0x2c2   :  { %v878_v34 = vadd.f32 %v877_v32, %v876_v30  ;;  %v896_v35 = vadd.f32 %v895_v33, %v894_v31 }
 0x2c4   :  { %1121 = vrcp.f32 %v878_v34 }
 0x2c5   :  { %1123 = vrcp.f32 %v896_v35 }
 0x2d1   :  { %v1122_v36 = vpop.eup %1121 }
 0x2d2   :  { %v1124_v37 = vpop.eup %1123  ;;  %v882_v38 = vmul.f32 %v1122_v36, %v1120_v21 }
 0x2d3   :  { %v900_v39 = vmul.f32 %v1124_v37, %v1120_v21 }
 0x2d4   :  { %v885_v40 = vsel %vm806_vm2, %v882_v38, %v796_v57 }
 0x2d5   :  { %v903_v41 = vsel %vm832_vm3, %v900_v39, %v885_v40 }
 0x2d6   :  { %906 = vst [vmem:[#allocation2 + $0x10] sm:$0xff] %v903_v41 }
 0x2d7   :  { %1136 = shalt.err (!%p1133_p4)
}
 0x2d8   :  { %s1149_s25 = smov 128   ;;  %s1150_s26 = smov 8  }
 0x2d9   :  { %918 = dma.vmem_to_hbm [thread:$0]  %s913_s24, 384, %s1409_s9, [#allocation3], %s1149_s25, %s1149_s25, %s1150_s26  }
 0x2da   :  { %1145 = dma.done.wait [#allocation3], 384  }
 0x2db   :  { %1146 = vsyncadd [#allocation3], 4294966912 }
 0x2dc   :  { %922 = vsyncpa [#allocation3], 1 }

</bundles_post_ra>
